<compile_context>
chip_gen: v5e
topology: v5e:2x2
jax: 0.10.0
libtpu: 0.0.40
codegen_flags: <defaults>
</compile_context>

<pallas_src>
import functools

import jax
import jax.numpy as jnp
from jax import lax
from jax.experimental import pallas as pl
from jax.experimental.pallas import tpu as pltpu


# ----------------------------- Pallas kernel --------------------------------
def _pm_diffusion_kernel(
    x0_ref,      # VMEM (bblk, T, D) f32 : x_start
    nz_ref,      # VMEM (bblk, T, D) f32 : noise
    cond_ref,    # VMEM (bblk, T, C) f32 : conditioning
    sac_ref,     # VMEM (bblk, 1, 1) f32 : sqrt_alphas_cumprod[t]
    s1m_ref,     # VMEM (bblk, 1, 1) f32 : sqrt_one_minus_alphas_cumprod[t]
    wp2_ref,     # VMEM (bblk, 1, 1) f32 : sqrt(p2_loss_weight[t])
    mask_ref,    # VMEM (bblk, T, 1) f32 : padding mask
    w1x_ref,     # VMEM (D, H) bf16
    w1c_ref,     # VMEM (C, H) bf16
    b1_ref,      # VMEM (1, H) f32
    w2_ref,      # VMEM (H, D) bf16
    b2_ref,      # VMEM (1, D) f32
    out_ref,     # VMEM (1, 1, 128) f32 : lanes 0/1/2 = recon/vel/acc partials
    *,
    bblk: int,
    seq_t: int,
    dim_d: int,
    dim_c: int,
):
    T, D, C = seq_t, dim_d, dim_c
    R = bblk * T
    bf16 = jnp.bfloat16
    f32 = jnp.float32

    x0 = x0_ref[...]                                            # (bblk,T,D) f32
    # q_sample: x_noisy = sqrt(ac)*x0 + sqrt(1-ac)*noise (per-sample scalars)
    xn = x0 * sac_ref[...] + nz_ref[...] * s1m_ref[...]

    # --- stand-in denoiser (2-layer MLP), bf16 MXU operands / f32 accumulate --
    # TODO(synk): the real `self.model` (cond_drop_prob dropout, guided_forward
    # CFG) is an external module; a fixed MLP stands in so the matmul path is real.
    h = jnp.dot(xn.reshape(R, D).astype(bf16), w1x_ref[...],
                preferred_element_type=f32)
    h = h + jnp.dot(cond_ref[...].reshape(R, C).astype(bf16), w1c_ref[...],
                    preferred_element_type=f32)
    h = jnp.maximum(h + b1_ref[...], 0.0)                       # (R,H)
    pred = jnp.dot(h.astype(bf16), w2_ref[...],
                   preferred_element_type=f32) + b2_ref[...]    # (R,D)
    pred3 = pred.reshape(bblk, T, D) * mask_ref[...]            # (bblk,T,D)

    # d = (pred - x0) * sqrt(p2_weight[t]) per sample, so every quadratic loss
    # below picks up the p2 weighting automatically.
    d3 = (pred3 - x0) * wp2_ref[...]                            # (bblk,T,D) f32
    d2 = d3.reshape(R, D)

    # per-row validity masks for 1st / 2nd differences inside each sample
    tloc = lax.broadcasted_iota(jnp.int32, (bblk, T, 1), 1)
    m1 = jnp.where(tloc <= T - 2, 1.0, 0.0)                     # (bblk,T,1) f32
    m2 = jnp.where(tloc <= T - 3, 1.0, 0.0)

    # velocity / acceleration via sublane roll (XLU) instead of R x R matmuls.
    # roll(d2, R-1, axis=0)[i] == d2[(i+1) % R]  (jnp.roll semantics), so
    # vel[i] = d[i+1] - d[i]; rows crossing sample boundaries are masked out.
    vel2 = ((pltpu.roll(d2, shift=R - 1, axis=0) - d2)
            .reshape(bblk, T, D) * m1).reshape(R, D)
    acc2 = ((pltpu.roll(vel2, shift=R - 1, axis=0) - vel2)
            .reshape(bblk, T, D) * m2).reshape(R, D)

    recon_p = jnp.sum(d2 * d2) * (1.0 / (T * D))
    vel_p = jnp.sum(vel2 * vel2) * (1.0 / ((T - 1) * D))
    acc_p = jnp.sum(acc2 * acc2) * (1.0 / ((T - 2) * D))

    lane = lax.broadcasted_iota(jnp.int32, out_ref.shape, 2)
    out_ref[...] = (jnp.where(lane == 0, recon_p, 0.0)
                    + jnp.where(lane == 1, vel_p, 0.0)
                    + jnp.where(lane == 2, acc_p, 0.0)).astype(out_ref.dtype)


# ------------------------------ wrapper --------------------------------------
def _pick_bblk(B: int, T: int) -> int:
    """Rows-per-step target ~512; on v7x keep >=2 grid blocks for megacore."""
    target_rows = 512
    bblk = max(1, min(B, max(1, target_rows // T)))
    try:
        kind = jax.devices()[0].device_kind.lower()
    except Exception:  # pragma: no cover - defensive only
        kind = ""
    if ("v7" in kind) and B >= 2:
        bblk = min(bblk, max(1, B // 2))
    while B % bblk != 0:
        bblk -= 1
    return bblk


@functools.partial(jax.jit, static_argnums=(7,))
def _pm_diffusion_forward_impl(x_start, cond, padding_mask, t, noise, params,
                               schedule, bblk):
    B, T, D = x_start.shape
    C = cond.shape[-1]
    H = params["w1x"].shape[-1]
    f32 = jnp.float32
    num_blocks = B // bblk

    sac = schedule["sqrt_alphas_cumprod"][t].astype(f32).reshape(B, 1, 1)
    s1m = schedule["sqrt_one_minus_alphas_cumprod"][t].astype(f32).reshape(B, 1, 1)
    wp2 = jnp.sqrt(schedule["p2_loss_weight"][t].astype(f32)).reshape(B, 1, 1)
    mask3 = padding_mask.astype(f32).reshape(B, T, 1)

    w1x = params["w1x"].astype(jnp.bfloat16)
    w1c = params["w1c"].astype(jnp.bfloat16)
    b1 = params["b1"].astype(f32)
    w2 = params["w2"].astype(jnp.bfloat16)
    b2 = params["b2"].astype(f32)

    kernel = functools.partial(_pm_diffusion_kernel, bblk=bblk, seq_t=T,
                               dim_d=D, dim_c=C)

    out = pl.pallas_call(
        kernel,
        out_shape=jax.ShapeDtypeStruct((num_blocks, 1, 128), f32),
        grid=(num_blocks,),
        in_specs=[
            pl.BlockSpec((bblk, T, D), lambda b: (b, 0, 0)),   # x_start
            pl.BlockSpec((bblk, T, D), lambda b: (b, 0, 0)),   # noise
            pl.BlockSpec((bblk, T, C), lambda b: (b, 0, 0)),   # cond
            pl.BlockSpec((bblk, 1, 1), lambda b: (b, 0, 0)),   # sqrt_ac[t]
            pl.BlockSpec((bblk, 1, 1), lambda b: (b, 0, 0)),   # sqrt_1m_ac[t]
            pl.BlockSpec((bblk, 1, 1), lambda b: (b, 0, 0)),   # sqrt(p2w[t])
            pl.BlockSpec((bblk, T, 1), lambda b: (b, 0, 0)),   # padding mask
            pl.BlockSpec((D, H), lambda b: (0, 0)),            # w1x
            pl.BlockSpec((C, H), lambda b: (0, 0)),            # w1c
            pl.BlockSpec((1, H), lambda b: (0, 0)),            # b1
            pl.BlockSpec((H, D), lambda b: (0, 0)),            # w2
            pl.BlockSpec((1, D), lambda b: (0, 0)),            # b2
        ],
        out_specs=pl.BlockSpec((1, 1, 128), lambda b: (b, 0, 0)),
        compiler_params=pltpu.CompilerParams(
            dimension_semantics=("parallel",)),
    )(x_start.astype(f32), noise.astype(f32), cond.astype(f32),
      sac, s1m, wp2, mask3, w1x, w1c, b1, w2, b2)

    inv_b = 1.0 / B
    return {
        "recon": out[:, 0, 0].sum() * inv_b,
        "vel": out[:, 0, 1].sum() * inv_b,
        "acc": out[:, 0, 2].sum() * inv_b,
    }


def pm_diffusion_forward(x_start, cond, padding_mask, t, noise, params, schedule):
    """Computes {'recon','vel','acc'} exactly as PMDiffusion.p_loss (l2, pred_x)."""
    B, T, _ = x_start.shape
    bblk = _pick_bblk(B, T)
    return _pm_diffusion_forward_impl(x_start, cond, padding_mask, t, noise,
                                      params, schedule, bblk)


# --------------------------- reference (pure JAX, f32) ------------------------
def reference_losses(x_start, cond, padding_mask, t, noise, params, schedule):
    sac = schedule["sqrt_alphas_cumprod"][t][:, None, None]
    s1m = schedule["sqrt_one_minus_alphas_cumprod"][t][:, None, None]
    p2w = schedule["p2_loss_weight"][t]
    x_noisy = sac * x_start + s1m * noise
    h = (jnp.einsum("btd,dh->bth", x_noisy, params["w1x"])
         + jnp.einsum("btc,ch->bth", cond, params["w1c"]) + params["b1"])
    h = jnp.maximum(h, 0.0)
    pred = jnp.einsum("bth,hd->btd", h, params["w2"]) + params["b2"]
    pred = pred * padding_mask[..., None]

    def p_loss_help(a, b):
        per = ((a - b) ** 2).reshape(a.shape[0], -1).mean(axis=-1)
        return (per * p2w).mean()

    xv, yv = pred[:, 1:] - pred[:, :-1], x_start[:, 1:] - x_start[:, :-1]
    xa, ya = xv[:, 1:] - xv[:, :-1], yv[:, 1:] - yv[:, :-1]
    return {"recon": p_loss_help(pred, x_start),
            "vel": p_loss_help(xv, yv),
            "acc": p_loss_help(xa, ya)}


# --------------------------- schedule / params --------------------------------
def make_schedule(timesteps=1000, use_p2=False):
    betas = jnp.linspace(1e-4, 2e-2, timesteps, dtype=jnp.float32)
    alphas = 1.0 - betas
    alphas_cumprod = jnp.cumprod(alphas, axis=0)
    gamma = 0.5 if use_p2 else 0.0
    p2 = (1.0 + alphas_cumprod / (1.0 - alphas_cumprod)) ** (-gamma)
    return {
        "sqrt_alphas_cumprod": jnp.sqrt(alphas_cumprod),
        "sqrt_one_minus_alphas_cumprod": jnp.sqrt(1.0 - alphas_cumprod),
        "p2_loss_weight": p2,
    }


def make_model_params(key, D, C, H):
    k1, k2, k3, k4 = jax.random.split(key, 4)
    return {
        "w1x": jax.random.normal(k1, (D, H), jnp.float32) * 0.05,
        "w1c": jax.random.normal(k2, (C, H), jnp.float32) * 0.05,
        "b1": jax.random.normal(k3, (1, H), jnp.float32) * 0.01,
        "w2": jax.random.normal(k4, (H, D), jnp.float32) * 0.05,
        "b2": jnp.zeros((1, D), jnp.float32),
    }


# --------------------------------- main ---------------------------------------
if __name__ == "__main__":
    B, T, D, C, H = 2, 16, 128, 32, 128
    TIMESTEPS = 1000

    key = jax.random.PRNGKey(0)
    kx, kc, kt, kn, kp = jax.random.split(key, 5)

    x_start = jax.random.normal(kx, (B, T, D), jnp.float32)
    cond = jax.random.normal(kc, (B, T, C), jnp.float32)
    padding_mask = jnp.ones((B, T), jnp.float32)

    # forward(): t ~ randint(0, timesteps, (B,)); noise ~ randn_like(x)
    t = jax.random.randint(kt, (B,), 0, TIMESTEPS)
    noise = jax.random.normal(kn, (B, T, D), jnp.float32)

    schedule = make_schedule(TIMESTEPS, use_p2=False)
    params = make_model_params(kp, D, C, H)

    losses = pm_diffusion_forward(
        x_start, cond, padding_mask, t, noise, params, schedule
    )
    losses = jax.block_until_ready(losses)
    ref = reference_losses(x_start, cond, padding_mask, t, noise, params, schedule)

    for name in ("recon", "vel", "acc"):
        v = float(losses[name])
        r = float(ref[name])
        assert v == v and abs(v) < 1e9, f"bad loss {name}={v}"
        assert abs(v - r) <= 5e-2 * max(1.0, abs(r)), (name, v, r)

    print("KERNEL_OK")
</pallas_src>

<mosaic_0001>
module attributes {stable_mosaic.version = 11 : i64} {
  func.func @_pm_diffusion_kernel(%arg0: i32, %arg1: memref<2x16x128xf32, #tpu.memory_space<vmem>>, %arg2: memref<2x16x128xf32, #tpu.memory_space<vmem>>, %arg3: memref<2x16x32xf32, #tpu.memory_space<vmem>>, %arg4: memref<2x1x1xf32, #tpu.memory_space<vmem>>, %arg5: memref<2x1x1xf32, #tpu.memory_space<vmem>>, %arg6: memref<2x1x1xf32, #tpu.memory_space<vmem>>, %arg7: memref<2x16x1xf32, #tpu.memory_space<vmem>>, %arg8: memref<128x128xbf16, #tpu.memory_space<vmem>>, %arg9: memref<32x128xbf16, #tpu.memory_space<vmem>>, %arg10: memref<1x128xf32, #tpu.memory_space<vmem>>, %arg11: memref<128x128xbf16, #tpu.memory_space<vmem>>, %arg12: memref<1x128xf32, #tpu.memory_space<vmem>>, %arg13: memref<1x1x128xf32, #tpu.memory_space<vmem>>) attributes {dimension_semantics = [#tpu.dimension_semantics<parallel>], iteration_bounds = array<i64: 1>, scalar_prefetch = 0 : i64, scratch_operands = 0 : i64, tpu.core_type = #tpu.core_type<tc>, window_params = [{transform_indices = @transform_0, window_bounds = array<i64: 2, 16, 128>}, {transform_indices = @transform_1, window_bounds = array<i64: 2, 16, 128>}, {transform_indices = @transform_2, window_bounds = array<i64: 2, 16, 32>}, {transform_indices = @transform_3, window_bounds = array<i64: 2, 1, 1>}, {transform_indices = @transform_4, window_bounds = array<i64: 2, 1, 1>}, {transform_indices = @transform_5, window_bounds = array<i64: 2, 1, 1>}, {transform_indices = @transform_6, window_bounds = array<i64: 2, 16, 1>}, {pipeline_mode = #tpu.pipeline_mode<synchronous>, transform_indices = @transform_7, window_bounds = array<i64: 128, 128>}, {pipeline_mode = #tpu.pipeline_mode<synchronous>, transform_indices = @transform_8, window_bounds = array<i64: 32, 128>}, {pipeline_mode = #tpu.pipeline_mode<synchronous>, transform_indices = @transform_9, window_bounds = array<i64: 1, 128>}, {pipeline_mode = #tpu.pipeline_mode<synchronous>, transform_indices = @transform_10, window_bounds = array<i64: 128, 128>}, {pipeline_mode = #tpu.pipeline_mode<synchronous>, transform_indices = @transform_11, window_bounds = array<i64: 1, 128>}, {transform_indices = @transform_12, window_bounds = array<i64: 1, 1, 128>}]} {
    %c0 = arith.constant 0 : index
    %c0_0 = arith.constant 0 : index
    %c0_1 = arith.constant 0 : index
    %0 = vector.load %arg1[%c0, %c0_0, %c0_1] : memref<2x16x128xf32, #tpu.memory_space<vmem>>, vector<2x16x128xf32>
    %c0_2 = arith.constant 0 : index
    %c0_3 = arith.constant 0 : index
    %c0_4 = arith.constant 0 : index
    %1 = vector.load %arg4[%c0_2, %c0_3, %c0_4] : memref<2x1x1xf32, #tpu.memory_space<vmem>>, vector<2x1x1xf32>
    %2 = vector.broadcast %1 : vector<2x1x1xf32> to vector<2x16x128xf32>
    %3 = arith.mulf %0, %2 : vector<2x16x128xf32>
    %c0_5 = arith.constant 0 : index
    %c0_6 = arith.constant 0 : index
    %c0_7 = arith.constant 0 : index
    %4 = vector.load %arg2[%c0_5, %c0_6, %c0_7] : memref<2x16x128xf32, #tpu.memory_space<vmem>>, vector<2x16x128xf32>
    %c0_8 = arith.constant 0 : index
    %c0_9 = arith.constant 0 : index
    %c0_10 = arith.constant 0 : index
    %5 = vector.load %arg5[%c0_8, %c0_9, %c0_10] : memref<2x1x1xf32, #tpu.memory_space<vmem>>, vector<2x1x1xf32>
    %6 = vector.broadcast %5 : vector<2x1x1xf32> to vector<2x16x128xf32>
    %7 = arith.mulf %4, %6 : vector<2x16x128xf32>
    %8 = arith.addf %3, %7 : vector<2x16x128xf32>
    %9 = vector.shape_cast %8 : vector<2x16x128xf32> to vector<32x128xf32>
    %10 = arith.truncf %9 : vector<32x128xf32> to vector<32x128xbf16>
    %c0_11 = arith.constant 0 : index
    %c0_12 = arith.constant 0 : index
    %11 = vector.load %arg8[%c0_11, %c0_12] : memref<128x128xbf16, #tpu.memory_space<vmem>>, vector<128x128xbf16>
    %cst = arith.constant dense<0.000000e+00> : vector<32x128xf32>
    %12 = tpu.matmul %10, %11, %cst {dimension_numbers = #tpu.dot_dimension_numbers<[1], [0], [0], [1], [0, 0, 1, 1], [], []>} : vector<32x128xbf16>, vector<128x128xbf16>, vector<32x128xf32> -> vector<32x128xf32>
    %c0_13 = arith.constant 0 : index
    %c0_14 = arith.constant 0 : index
    %c0_15 = arith.constant 0 : index
    %13 = vector.load %arg3[%c0_13, %c0_14, %c0_15] : memref<2x16x32xf32, #tpu.memory_space<vmem>>, vector<2x16x32xf32>
    %14 = vector.shape_cast %13 : vector<2x16x32xf32> to vector<32x32xf32>
    %15 = arith.truncf %14 : vector<32x32xf32> to vector<32x32xbf16>
    %c0_16 = arith.constant 0 : index
    %c0_17 = arith.constant 0 : index
    %16 = vector.load %arg9[%c0_16, %c0_17] : memref<32x128xbf16, #tpu.memory_space<vmem>>, vector<32x128xbf16>
    %cst_18 = arith.constant dense<0.000000e+00> : vector<32x128xf32>
    %17 = tpu.matmul %15, %16, %cst_18 {dimension_numbers = #tpu.dot_dimension_numbers<[1], [0], [0], [1], [0, 0, 1, 1], [], []>} : vector<32x32xbf16>, vector<32x128xbf16>, vector<32x128xf32> -> vector<32x128xf32>
    %18 = arith.addf %12, %17 : vector<32x128xf32>
    %c0_19 = arith.constant 0 : index
    %c0_20 = arith.constant 0 : index
    %19 = vector.load %arg10[%c0_19, %c0_20] : memref<1x128xf32, #tpu.memory_space<vmem>>, vector<1x128xf32>
    %20 = vector.broadcast %19 : vector<1x128xf32> to vector<32x128xf32>
    %21 = arith.addf %18, %20 : vector<32x128xf32>
    %cst_21 = arith.constant 0.000000e+00 : f32
    %22 = vector.broadcast %cst_21 : f32 to vector<32x128xf32>
    %23 = arith.maximumf %21, %22 : vector<32x128xf32>
    %24 = arith.truncf %23 : vector<32x128xf32> to vector<32x128xbf16>
    %c0_22 = arith.constant 0 : index
    %c0_23 = arith.constant 0 : index
    %25 = vector.load %arg11[%c0_22, %c0_23] : memref<128x128xbf16, #tpu.memory_space<vmem>>, vector<128x128xbf16>
    %cst_24 = arith.constant dense<0.000000e+00> : vector<32x128xf32>
    %26 = tpu.matmul %24, %25, %cst_24 {dimension_numbers = #tpu.dot_dimension_numbers<[1], [0], [0], [1], [0, 0, 1, 1], [], []>} : vector<32x128xbf16>, vector<128x128xbf16>, vector<32x128xf32> -> vector<32x128xf32>
    %c0_25 = arith.constant 0 : index
    %c0_26 = arith.constant 0 : index
    %27 = vector.load %arg12[%c0_25, %c0_26] : memref<1x128xf32, #tpu.memory_space<vmem>>, vector<1x128xf32>
    %28 = vector.broadcast %27 : vector<1x128xf32> to vector<32x128xf32>
    %29 = arith.addf %26, %28 : vector<32x128xf32>
    %30 = vector.shape_cast %29 : vector<32x128xf32> to vector<2x16x128xf32>
    %c0_27 = arith.constant 0 : index
    %c0_28 = arith.constant 0 : index
    %c0_29 = arith.constant 0 : index
    %31 = vector.load %arg7[%c0_27, %c0_28, %c0_29] : memref<2x16x1xf32, #tpu.memory_space<vmem>>, vector<2x16x1xf32>
    %32 = vector.broadcast %31 : vector<2x16x1xf32> to vector<2x16x128xf32>
    %33 = arith.mulf %30, %32 : vector<2x16x128xf32>
    %34 = arith.subf %33, %0 : vector<2x16x128xf32>
    %c0_30 = arith.constant 0 : index
    %c0_31 = arith.constant 0 : index
    %c0_32 = arith.constant 0 : index
    %35 = vector.load %arg6[%c0_30, %c0_31, %c0_32] : memref<2x1x1xf32, #tpu.memory_space<vmem>>, vector<2x1x1xf32>
    %36 = vector.broadcast %35 : vector<2x1x1xf32> to vector<2x16x128xf32>
    %37 = arith.mulf %34, %36 : vector<2x16x128xf32>
    %38 = vector.shape_cast %37 : vector<2x16x128xf32> to vector<32x128xf32>
    %39 = tpu.iota {dimensions = array<i32: 1>} : vector<2x16x1xi32>
    %c14_i32 = arith.constant 14 : i32
    %40 = vector.broadcast %c14_i32 : i32 to vector<2x16x1xi32>
    %41 = arith.cmpi sle, %39, %40 : vector<2x16x1xi32>
    %cst_33 = arith.constant 1.000000e+00 : f32
    %cst_34 = arith.constant 0.000000e+00 : f32
    %42 = vector.broadcast %cst_33 : f32 to vector<2x16x1xf32>
    %43 = vector.broadcast %cst_34 : f32 to vector<2x16x1xf32>
    %44 = arith.select %41, %42, %43 : vector<2x16x1xi1>, vector<2x16x1xf32>
    %c13_i32 = arith.constant 13 : i32
    %45 = vector.broadcast %c13_i32 : i32 to vector<2x16x1xi32>
    %46 = arith.cmpi sle, %39, %45 : vector<2x16x1xi32>
    %cst_35 = arith.constant 1.000000e+00 : f32
    %cst_36 = arith.constant 0.000000e+00 : f32
    %47 = vector.broadcast %cst_35 : f32 to vector<2x16x1xf32>
    %48 = vector.broadcast %cst_36 : f32 to vector<2x16x1xf32>
    %49 = arith.select %46, %47, %48 : vector<2x16x1xi1>, vector<2x16x1xf32>
    %c31_i32 = arith.constant 31 : i32
    %50 = tpu.dynamic_rotate %38 by %c31_i32 dim 0 : vector<32x128xf32>, i32 -> vector<32x128xf32>
    %51 = arith.subf %50, %38 : vector<32x128xf32>
    %52 = vector.shape_cast %51 : vector<32x128xf32> to vector<2x16x128xf32>
    %53 = vector.broadcast %44 : vector<2x16x1xf32> to vector<2x16x128xf32>
    %54 = arith.mulf %52, %53 : vector<2x16x128xf32>
    %55 = vector.shape_cast %54 : vector<2x16x128xf32> to vector<32x128xf32>
    %c31_i32_37 = arith.constant 31 : i32
    %56 = tpu.dynamic_rotate %55 by %c31_i32_37 dim 0 : vector<32x128xf32>, i32 -> vector<32x128xf32>
    %57 = arith.subf %56, %55 : vector<32x128xf32>
    %58 = vector.shape_cast %57 : vector<32x128xf32> to vector<2x16x128xf32>
    %59 = vector.broadcast %49 : vector<2x16x1xf32> to vector<2x16x128xf32>
    %60 = arith.mulf %58, %59 : vector<2x16x128xf32>
    %61 = vector.shape_cast %60 : vector<2x16x128xf32> to vector<32x128xf32>
    %62 = arith.mulf %38, %38 : vector<32x128xf32>
    %63 = vector.shape_cast %62 : vector<32x128xf32> to vector<1x32x128xf32>
    %cst_38 = arith.constant dense<0.000000e+00> : vector<1xf32>
    %64 = vector.multi_reduction <add>, %63, %cst_38 [1, 2] : vector<1x32x128xf32> to vector<1xf32>
    %65 = vector.shape_cast %64 : vector<1xf32> to vector<1x1x1xf32>
    %66 = vector.extract %65[0, 0, 0] : f32 from vector<1x1x1xf32>
    %cst_39 = arith.constant 4.8828125E-4 : f32
    %67 = arith.mulf %66, %cst_39 : f32
    %68 = arith.mulf %55, %55 : vector<32x128xf32>
    %69 = vector.shape_cast %68 : vector<32x128xf32> to vector<1x32x128xf32>
    %cst_40 = arith.constant dense<0.000000e+00> : vector<1xf32>
    %70 = vector.multi_reduction <add>, %69, %cst_40 [1, 2] : vector<1x32x128xf32> to vector<1xf32>
    %71 = vector.shape_cast %70 : vector<1xf32> to vector<1x1x1xf32>
    %72 = vector.extract %71[0, 0, 0] : f32 from vector<1x1x1xf32>
    %cst_41 = arith.constant 5.2083336E-4 : f32
    %73 = arith.mulf %72, %cst_41 : f32
    %74 = arith.mulf %61, %61 : vector<32x128xf32>
    %75 = vector.shape_cast %74 : vector<32x128xf32> to vector<1x32x128xf32>
    %cst_42 = arith.constant dense<0.000000e+00> : vector<1xf32>
    %76 = vector.multi_reduction <add>, %75, %cst_42 [1, 2] : vector<1x32x128xf32> to vector<1xf32>
    %77 = vector.shape_cast %76 : vector<1xf32> to vector<1x1x1xf32>
    %78 = vector.extract %77[0, 0, 0] : f32 from vector<1x1x1xf32>
    %cst_43 = arith.constant 5.58035739E-4 : f32
    %79 = arith.mulf %78, %cst_43 : f32
    %80 = tpu.iota {dimensions = array<i32: 2>} : vector<1x1x128xi32>
    %c0_i32 = arith.constant 0 : i32
    %81 = vector.broadcast %c0_i32 : i32 to vector<1x1x128xi32>
    %82 = arith.cmpi eq, %80, %81 : vector<1x1x128xi32>
    %cst_44 = arith.constant 0.000000e+00 : f32
    %83 = vector.broadcast %67 : f32 to vector<1x1x128xf32>
    %84 = vector.broadcast %cst_44 : f32 to vector<1x1x128xf32>
    %85 = arith.select %82, %83, %84 : vector<1x1x128xi1>, vector<1x1x128xf32>
    %c1_i32 = arith.constant 1 : i32
    %86 = vector.broadcast %c1_i32 : i32 to vector<1x1x128xi32>
    %87 = arith.cmpi eq, %80, %86 : vector<1x1x128xi32>
    %cst_45 = arith.constant 0.000000e+00 : f32
    %88 = vector.broadcast %73 : f32 to vector<1x1x128xf32>
    %89 = vector.broadcast %cst_45 : f32 to vector<1x1x128xf32>
    %90 = arith.select %87, %88, %89 : vector<1x1x128xi1>, vector<1x1x128xf32>
    %91 = arith.addf %85, %90 : vector<1x1x128xf32>
    %c2_i32 = arith.constant 2 : i32
    %92 = vector.broadcast %c2_i32 : i32 to vector<1x1x128xi32>
    %93 = arith.cmpi eq, %80, %92 : vector<1x1x128xi32>
    %cst_46 = arith.constant 0.000000e+00 : f32
    %94 = vector.broadcast %79 : f32 to vector<1x1x128xf32>
    %95 = vector.broadcast %cst_46 : f32 to vector<1x1x128xf32>
    %96 = arith.select %93, %94, %95 : vector<1x1x128xi1>, vector<1x1x128xf32>
    %97 = arith.addf %91, %96 : vector<1x1x128xf32>
    %c0_47 = arith.constant 0 : index
    %c0_48 = arith.constant 0 : index
    %c0_49 = arith.constant 0 : index
    %98 = vector.load %arg13[%c0_47, %c0_48, %c0_49] : memref<1x1x128xf32, #tpu.memory_space<vmem>>, vector<1x1x128xf32>
    tpu.vector_store %arg13[%c0_47, %c0_48, %c0_49], %97 {strides = array<i32>} : memref<1x1x128xf32, #tpu.memory_space<vmem>>, vector<1x1x128xf32>,
    return
  }
  func.func @transform_0(%arg0: i32) -> (i32, i32, i32) {
    %c0_i32 = arith.constant 0 : i32
    %c0_i32_0 = arith.constant 0 : i32
    %c0_i32_1 = arith.constant 0 : i32
    return %arg0, %c0_i32, %c0_i32_0 : i32, i32, i32
  }
  func.func @transform_1(%arg0: i32) -> (i32, i32, i32) {
    %c0_i32 = arith.constant 0 : i32
    %c0_i32_0 = arith.constant 0 : i32
    %c0_i32_1 = arith.constant 0 : i32
    return %arg0, %c0_i32, %c0_i32_0 : i32, i32, i32
  }
  func.func @transform_2(%arg0: i32) -> (i32, i32, i32) {
    %c0_i32 = arith.constant 0 : i32
    %c0_i32_0 = arith.constant 0 : i32
    %c0_i32_1 = arith.constant 0 : i32
    return %arg0, %c0_i32, %c0_i32_0 : i32, i32, i32
  }
  func.func @transform_3(%arg0: i32) -> (i32, i32, i32) {
    %c0_i32 = arith.constant 0 : i32
    %c0_i32_0 = arith.constant 0 : i32
    %c0_i32_1 = arith.constant 0 : i32
    return %arg0, %c0_i32, %c0_i32_0 : i32, i32, i32
  }
  func.func @transform_4(%arg0: i32) -> (i32, i32, i32) {
    %c0_i32 = arith.constant 0 : i32
    %c0_i32_0 = arith.constant 0 : i32
    %c0_i32_1 = arith.constant 0 : i32
    return %arg0, %c0_i32, %c0_i32_0 : i32, i32, i32
  }
  func.func @transform_5(%arg0: i32) -> (i32, i32, i32) {
    %c0_i32 = arith.constant 0 : i32
    %c0_i32_0 = arith.constant 0 : i32
    %c0_i32_1 = arith.constant 0 : i32
    return %arg0, %c0_i32, %c0_i32_0 : i32, i32, i32
  }
  func.func @transform_6(%arg0: i32) -> (i32, i32, i32) {
    %c0_i32 = arith.constant 0 : i32
    %c0_i32_0 = arith.constant 0 : i32
    %c0_i32_1 = arith.constant 0 : i32
    return %arg0, %c0_i32, %c0_i32_0 : i32, i32, i32
  }
  func.func @transform_7(%arg0: i32) -> (i32, i32) {
    %c0_i32 = arith.constant 0 : i32
    %c0_i32_0 = arith.constant 0 : i32
    %c0_i32_1 = arith.constant 0 : i32
    return %c0_i32, %c0_i32_0 : i32, i32
  }
  func.func @transform_8(%arg0: i32) -> (i32, i32) {
    %c0_i32 = arith.constant 0 : i32
    %c0_i32_0 = arith.constant 0 : i32
    %c0_i32_1 = arith.constant 0 : i32
    return %c0_i32, %c0_i32_0 : i32, i32
  }
  func.func @transform_9(%arg0: i32) -> (i32, i32) {
    %c0_i32 = arith.constant 0 : i32
    %c0_i32_0 = arith.constant 0 : i32
    %c0_i32_1 = arith.constant 0 : i32
    return %c0_i32, %c0_i32_0 : i32, i32
  }
  func.func @transform_10(%arg0: i32) -> (i32, i32) {
    %c0_i32 = arith.constant 0 : i32
    %c0_i32_0 = arith.constant 0 : i32
    %c0_i32_1 = arith.constant 0 : i32
    return %c0_i32, %c0_i32_0 : i32, i32
  }
  func.func @transform_11(%arg0: i32) -> (i32, i32) {
    %c0_i32 = arith.constant 0 : i32
    %c0_i32_0 = arith.constant 0 : i32
    %c0_i32_1 = arith.constant 0 : i32
    return %c0_i32, %c0_i32_0 : i32, i32
  }
  func.func @transform_12(%arg0: i32) -> (i32, i32, i32) {
    %c0_i32 = arith.constant 0 : i32
    %c0_i32_0 = arith.constant 0 : i32
    %c0_i32_1 = arith.constant 0 : i32
    return %arg0, %c0_i32, %c0_i32_0 : i32, i32, i32
  }
}

</mosaic_0001>

<bundles_post_ra>
// kernel: _pm_diffusion_forward_impl.1
= control target key start
LH: loop header
LB: loop body
LE: loop exit
PB: predicated region body
PF: predicated region fallthrough
CT: control target
= control target key end

     0   :  { %v614_v0 = vmov 0   ;;  %vm130_vm0 = vcmask 261120   ;;  %s838_s3 = inlined_call_operand.vmem [shape: f32[2,1,1], index: 3, kind: input, shape index: {}]   ;;  %s839_s4 = inlined_call_operand.vmem [shape: f32[2,1,1], index: 4, kind: input, shape index: {}]   ;;  %s840_s7 = inlined_call_operand.vmem [shape: bf16[128,128], index: 7, kind: input, shape index: {}]   ;;  %s841_s8 = inlined_call_operand.vmem [shape: bf16[32,128], index: 8, kind: input, shape index: {}]   ;;  %s842_s5 = inlined_call_operand.vmem [shape: f32[2,1,1], index: 5, kind: input, shape index: {}]   ;;  %s843_s2 = inlined_call_operand.vmem [shape: f32[2,16,32], index: 2, kind: input, shape index: {}]   ;;  %s844_s6 = inlined_call_operand.vmem [shape: f32[2,16,1], index: 6, kind: input, shape index: {}]   ;;  %s845_s9 = inlined_call_operand.vmem [shape: f32[1,128], index: 9, kind: input, shape index: {}]   ;;  %s846_s10 = inlined_call_operand.vmem [shape: bf16[128,128], index: 10, kind: input, shape index: {}]   ;;  %s847_s0 = inlined_call_operand.vmem [shape: f32[2,16,128], index: 0, kind: input, shape index: {}]   ;;  %s848_s1 = inlined_call_operand.vmem [shape: f32[2,16,128], index: 1, kind: input, shape index: {}]   ;;  %s849_s11 = inlined_call_operand.vmem [shape: f32[1,128], index: 11, kind: input, shape index: {}]   ;;  %s850_s12 = inlined_call_operand.vmem [shape: f32[1,1,128], index: 12, kind: output, shape index: {}]  }
   0x1   :  { %604 = vset.pattern.permute.xlu1 %v614_v0  ;;  %603 = vset.pattern.permute.xlu0 %v614_v0  ;;  %v606_v1 = vld [vmem:[%s838_s3 + $0x1] ss:$0 sm:$0xff]  ;;  %v607_v2 = vld [vmem:[%s838_s3] ss:$0 sm:$0xff]  ;;  %v568_v3 = vld [vmem:[%s840_s7 + $0x38] sm:$0xff] }
   0x2   :  { %605 = vset.pattern.permute.xlu2 %v614_v0  ;;  %57 = vperm.xlu0 %603, %v606_v1   ;;  %v570_v4 = vld [vmem:[%s841_s8 + $0x8] sm:$0xff]  ;;  %v608_v5 = vld [vmem:[%s839_s4 + $0x1] ss:$0 sm:$0xff]  ;;  %v567_v6 = vld [vmem:[%s840_s7 + $0x30] sm:$0xff] }
   0x3   :  { %53 = vperm.xlu1 %604, %v607_v2   ;;  %204 = vmatpush.bf16.msra.mxu1 %v568_v3  ;;  %v609_v7 = vld [vmem:[%s839_s4] ss:$0 sm:$0xff]  ;;  %v109_v10 = vld [vmem:[%s843_s2 + $0x8] sm:$0xff]  ;;  %v327_v14 = vld [vmem:[%s844_s6 + $0x18] sm:$0xff] }
   0x4   :  { %579 = vmatpush.bf16.msra.mxu3 %v568_v3  ;;  %143 = vmatpush.bf16.msra.mxu0 %v570_v4  ;;  %v569_v8 = vld [vmem:[%s841_s8] sm:$0xff]  ;;  %v566_v11 = vld [vmem:[%s840_s7 + $0x28] sm:$0xff]  ;;  %v564_v16 = vld [vmem:[%s840_s7 + $0x18] sm:$0xff] }
   0x5   :  { %v108_v9 = vld [vmem:[%s843_s2] sm:$0xff]  ;;  %v563_v18 = vld [vmem:[%s840_s7 + $0x10] sm:$0xff]  ;;  %v562_v19 = vld [vmem:[%s840_s7 + $0x8] sm:$0xff] }
   0x6   :  { %v112_v12 = vpack.c.bf16 %v109_v10, %v108_v9  ;;  %v565_v13 = vld [vmem:[%s840_s7 + $0x20] sm:$0xff]  ;;  %v110_v21 = vld [vmem:[%s843_s2 + $0x10] sm:$0xff]  ;;  %v111_v22 = vld [vmem:[%s843_s2 + $0x18] sm:$0xff] }
   0x7   :  { %205 = vmatpush.bf16.msra.mxu1 %v567_v6  ;;  %v324_v15 = vld [vmem:[%s844_s6] sm:$0xff]  ;;  %v113_v23 = vpack.c.bf16 %v111_v22, %v110_v21  ;;  %v578_v24 = vld [vmem:[%s846_s10 + $0x38] sm:$0xff]  ;;  %v577_v26 = vld [vmem:[%s846_s10 + $0x30] sm:$0xff] }
   0x8   :  { %580 = vmatpush.bf16.msra.mxu3 %v567_v6  ;;  %144 = vmatpush.bf16.msra.mxu0 %v569_v8  ;;  %v610_v17 = vld [vmem:[%s842_s5 + $0x1] ss:$0 sm:$0xff]  ;;  %v576_v28 = vld [vmem:[%s846_s10 + $0x28] sm:$0xff]  ;;  %v758_v29 = vld [vmem:[%s847_s0 + $0x10] sm:$0xff] }
   0x9   :  { %v561_v20 = vld [vmem:[%s840_s7] sm:$0xff]  ;;  %587 = vmatpush.bf16.msra.mxu2 %v578_v24  ;;  %v768_v31 = vld [vmem:[%s847_s0 + $0x8] sm:$0xff]  ;;  %v773_v32 = vld [vmem:[%s847_s0 + $0x18] sm:$0xff] }
   0xa   :  { %79 = vperm.xlu0 %603, %v608_v5   ;;  %v763_v30 = vld [vmem:[%s847_s0] sm:$0xff]  ;;  %v66_v33 = vld [vmem:[%s848_s1 + $0x10] sm:$0xff]  ;;  %v67_v34 = vld [vmem:[%s848_s1 + $0x18] sm:$0xff] }
   0xb   :  { %75 = vperm.xlu1 %604, %v609_v7   ;;  %206 = vmatpush.bf16.msra.mxu1 %v566_v11  ;;  %v64_v35 = vld [vmem:[%s848_s1] sm:$0xff]  ;;  %v65_v36 = vld [vmem:[%s848_s1 + $0x8] sm:$0xff]  ;;  %v574_v54 = vld [vmem:[%s846_s10 + $0x18] sm:$0xff] }
   0xc   :  { %581 = vmatpush.bf16.msra.mxu3 %v566_v11  ;;  %495 = vmatmul.msk.bf16.vlgmr.msra.gmra.mxu0 %vm130_vm0, %v112_v12  ;;  %v575_v53 = vld [vmem:[%s846_s10 + $0x20] sm:$0xff]  ;;  %v573_v55 = vld [vmem:[%s846_s10 + $0x10] sm:$0xff]  ;;  %v572_v56 = vld [vmem:[%s846_s10 + $0x8] sm:$0xff] }
   0xd   :  { %305 = vmatpush.bf16.msrb.mxu0 %v578_v24  ;;  %588 = vmatpush.bf16.msra.mxu2 %v577_v26  ;;  %v571_v57 = vld [vmem:[%s846_s10] sm:$0xff]  ;;  %v325_v59 = vld [vmem:[%s844_s6 + $0x8] sm:$0xff]  ;;  %v326_v61 = vld [vmem:[%s844_s6 + $0x10] sm:$0xff] }
   0xe   :  { %335 = vperm.xlu2 %605, %v325_v59   ;;  %v612_v0 = vld [vmem:[%s842_s5] ss:$0 sm:$0xff] }
   0xf   :  { %207 = vmatpush.bf16.msra.mxu1 %v565_v13  ;;  %v611_v2 = vld [vmem:[%s845_s9] ss:$0 sm:$0xff] }
  0x10   :  { %582 = vmatpush.bf16.msra.mxu3 %v565_v13  ;;  %v613_v22 = vld [vmem:[%s849_s11] ss:$0 sm:$0xff] }
  0x11   :  { %306 = vmatpush.bf16.msrb.mxu0 %v577_v26  ;;  %589 = vmatpush.bf16.msra.mxu2 %v576_v28 }
  0x12   :  { %345 = vperm.xlu0 %603, %v327_v14  }
  0x13   :  { %330 = vperm.xlu1 %604, %v324_v15   ;;  %208 = vmatpush.bf16.msra.mxu1 %v564_v16 }
  0x14   :  { %583 = vmatpush.bf16.msra.mxu3 %v564_v16 }
  0x15   :  { %307 = vmatpush.bf16.msrb.mxu0 %v576_v28  ;;  %590 = vmatpush.bf16.msra.mxu2 %v575_v53 }
  0x16   :  { %340 = vperm.xlu2 %605, %v326_v61  }
  0x17   :  { %209 = vmatpush.bf16.msra.mxu1 %v563_v18 }
  0x18   :  { %584 = vmatpush.bf16.msra.mxu3 %v563_v18 }
  0x19   :  { %308 = vmatpush.bf16.msrb.mxu0 %v575_v53  ;;  %591 = vmatpush.bf16.msra.mxu2 %v574_v54 }
  0x1a   :  { %367 = vperm.xlu0 %603, %v610_v17  }
  0x1b   :  { %210 = vmatpush.bf16.msra.mxu1 %v562_v19 }
  0x1c   :  { %585 = vmatpush.bf16.msra.mxu3 %v562_v19  ;;  %496 = vmatmul.msk.bf16.gmra.mxu0 %vm130_vm0, %v113_v23 }
  0x1d   :  { %309 = vmatpush.bf16.msrb.mxu0 %v574_v54  ;;  %592 = vmatpush.bf16.msra.mxu2 %v573_v55  ;;  %v615_v54 = vmov 0.0  }
  0x1e   :  { %363 = vperm.xlu2 %605, %v612_v0  }
  0x1f   :  { %211 = vmatpush.bf16.msra.mxu1 %v561_v20 }
  0x20   :  { %586 = vmatpush.bf16.msra.mxu3 %v561_v20 }
  0x21   :  { %310 = vmatpush.bf16.msrb.mxu0 %v573_v55  ;;  %593 = vmatpush.bf16.msra.mxu2 %v572_v56 }
  0x25   :  { %311 = vmatpush.bf16.msrb.mxu0 %v572_v56  ;;  %594 = vmatpush.bf16.msra.mxu2 %v571_v57 }
  0x29   :  { %312 = vmatpush.bf16.msrb.mxu0 %v571_v57 }
  0x68   :  { %v336_v20 = vpop.permute.xlu2 %335 }
  0x70   :  { %v341_v23 = vpop.permute.xlu2 %340 }
  0x74   :  { %v58_v25 = vpop.permute.xlu0 %57 }
  0x75   :  { %v54_v27 = vpop.permute.xlu1 %53  ;;  %v62_v40 = vmul.f32 %v58_v25, %v758_v29  ;;  %v63_v41 = vmul.f32 %v58_v25, %v773_v32 }
  0x76   :  { %v60_v37 = vmul.f32 %v54_v27, %v763_v30  ;;  %v61_v38 = vmul.f32 %v54_v27, %v768_v31 }
  0x7c   :  { %v80_v39 = vpop.permute.xlu0 %79 }
  0x7d   :  { %v84_v42 = vmul.f32 %v80_v39, %v66_v33  ;;  %v85_v43 = vmul.f32 %v80_v39, %v67_v34  ;;  %v76_v44 = vpop.permute.xlu1 %75  ;;  %v374_v34 = vlaneseq }
  0x7e   :  { %v82_v45 = vmul.f32 %v76_v44, %v64_v35  ;;  %v83_v46 = vmul.f32 %v76_v44, %v65_v36 }
  0x7f   :  { %v88_v47 = vadd.f32 %v84_v42, %v62_v40  ;;  %v89_v48 = vadd.f32 %v85_v43, %v63_v41  ;;  %v375_v40 = vshrl.u32 %v374_v34, 7  ;;  %v364_v41 = vpop.permute.xlu2 %363 }
  0x80   :  { %v86_v49 = vadd.f32 %v82_v45, %v60_v37  ;;  %v87_v50 = vadd.f32 %v83_v46, %v61_v38 }
  0x81   :  { %v91_v51 = vpack.c.bf16 %v89_v48, %v88_v47  ;;  %v376_v44 = vadd.s32 8, %v375_v40  ;;  %vm389_vm2 = vcmp.lt.s32.totalorder %v375_v40, 7 }
  0x82   :  { %v90_v52 = vpack.c.bf16 %v87_v50, %v86_v49 }
  0x83   :  { %217 = vmatmul.bf16.vlgmr.msra.gmra.mxu3 %v91_v51  ;;  %vm378_vm1 = vcmp.le.s32.totalorder %v376_v44, 14  ;;  %vm382_vm3 = vcmp.le.s32.totalorder %v376_v44, 13 }
  0x84   :  { %212 = vmatmul.bf16.vlgmr.msra.gmra.mxu1 %v90_v52  ;;  %v346_v25 = vpop.permute.xlu0 %345  ;;  %v380_v55 = vsel %vm378_vm1, 1.0, %v615_v54 }
  0x85   :  { %v331_v26 = vpop.permute.xlu1 %330 }
  0x89   :  { %v146_v58 = vpop.f32.mrf.mxu0 }
  0x8c   :  { %v368_v46 = vpop.permute.xlu0 %367 }
  0x91   :  { %v148_v60 = vpop.f32.mrf.mxu0 }
  0x99   :  { %v151_v63 = vpop.f32.mrf.mxu0 }
  0xa1   :  { %v153_v10 = vpop.f32.mrf.mxu0 }
 0x101   :  { %v213_v62 = vpop.f32.mrf.mxu1 }
 0x102   :  { %v214_v1 = vadd.f32 %v213_v62, %v146_v58 }
 0x104   :  { %v227_v5 = vadd.f32 %v611_v2, %v214_v1 }
 0x106   :  { %v218_v3 = vpop.f32.mrf.mxu3  ;;  %v231_v9 = vmax.f32 %v227_v5, 0.0 }
 0x107   :  { %v219_v7 = vadd.f32 %v218_v3, %v151_v63 }
 0x109   :  { %v215_v4 = vpop.f32.mrf.mxu1  ;;  %v229_v13 = vadd.f32 %v611_v2, %v219_v7 }
 0x10a   :  { %v216_v6 = vadd.f32 %v215_v4, %v148_v60 }
 0x10b   :  { %v233_v17 = vmax.f32 %v229_v13, 0.0 }
 0x10c   :  { %v228_v8 = vadd.f32 %v611_v2, %v216_v6 }
 0x10e   :  { %v232_v11 = vmax.f32 %v228_v8, 0.0  ;;  %v220_v12 = vpop.f32.mrf.mxu3 }
 0x10f   :  { %v221_v14 = vadd.f32 %v220_v12, %v153_v10 }
 0x110   :  { %v235_v15 = vpack.c.bf16 %v232_v11, %v231_v9 }
 0x111   :  { %v230_v16 = vadd.f32 %v611_v2, %v221_v14 }
 0x112   :  { %313 = vmatmul.bf16.vlgmr.msrb.gmra.mxu0 %v235_v15 }
 0x113   :  { %v234_v18 = vmax.f32 %v230_v16, 0.0 }
 0x115   :  { %v236_v19 = vpack.c.bf16 %v234_v18, %v233_v17  ;;  %v384_v17 = vsel %vm382_vm3, 1.0, %v615_v54 }
 0x117   :  { %318 = vmatmul.bf16.vlgmr.msra.gmra.mxu2 %v236_v19 }
 0x18f   :  { %v314_v21 = vpop.f32.mrf.mxu0 }
 0x190   :  { %v315_v24 = vadd.f32 %v613_v22, %v314_v21 }
 0x192   :  { %v348_v28 = vmul.f32 %v331_v26, %v315_v24 }
 0x194   :  { %v352_v38 = vsub.f32 %v348_v28, %v763_v30 }
 0x196   :  { %v370_v47 = vmul.f32 %v364_v41, %v352_v38 }
 0x197   :  { %v316_v27 = vpop.f32.mrf.mxu0 }
 0x198   :  { %v317_v33 = vadd.f32 %v613_v22, %v316_v27  ;;  %v385_v30 = vrot.slane %v370_v47, 1 }
 0x19a   :  { %v349_v35 = vmul.f32 %v336_v20, %v317_v33  ;;  %v319_v36 = vpop.f32.mrf.mxu2 }
 0x19b   :  { %v320_v37 = vadd.f32 %v613_v22, %v319_v36 }
 0x19c   :  { %v353_v39 = vsub.f32 %v349_v35, %v768_v31 }
 0x19d   :  { %v350_v42 = vmul.f32 %v341_v23, %v320_v37 }
 0x19e   :  { %v371_v43 = vmul.f32 %v364_v41, %v353_v39 }
 0x19f   :  { %v354_v45 = vsub.f32 %v350_v42, %v758_v29  ;;  %v418_v29 = vmul.f32 %v370_v47, %v370_v47 }
 0x1a0   :  { %v386_v49 = vrot.slane %v371_v43, 1  ;;  %v419_v31 = vmul.f32 %v371_v43, %v371_v43 }
 0x1a1   :  { %v372_v48 = vmul.f32 %v368_v46, %v354_v45 }
 0x1a2   :  { %v321_v50 = vpop.f32.mrf.mxu2  ;;  %v392_v57 = vsel %vm389_vm2, %v385_v30, %v386_v49  ;;  %v422_v63 = vadd.f32 %v419_v31, %v418_v29 }
 0x1a3   :  { %v387_v51 = vrot.slane %v372_v48, 1  ;;  %v322_v52 = vadd.f32 %v613_v22, %v321_v50  ;;  %v420_v60 = vmul.f32 %v372_v48, %v372_v48  ;;  %v394_v0 = vsub.f32 %v392_v57, %v370_v47 }
 0x1a5   :  { %v351_v53 = vmul.f32 %v346_v25, %v322_v52  ;;  %v391_v56 = vsel %vm389_vm2, %v386_v49, %v387_v51  ;;  %v423_v3 = vadd.f32 %v422_v63, %v420_v60  ;;  %v435_v9 = vmul.f32 %v394_v0, %v394_v0 }
 0x1a6   :  { %v395_v58 = vsub.f32 %v391_v56, %v371_v43 }
 0x1a7   :  { %v355_v59 = vsub.f32 %v351_v53, %v773_v32  ;;  %v402_v32 = vrot.slane %v394_v0, 1 }
 0x1a8   :  { %v399_v61 = vmul.f32 %v395_v58, %v380_v55 }
 0x1a9   :  { %v373_v62 = vmul.f32 %v368_v46, %v355_v59 }
 0x1aa   :  { %v436_v4 = vmul.f32 %v399_v61, %v399_v61  ;;  %v403_v5 = vrot.slane %v399_v61, 1 }
 0x1ab   :  { %v388_v1 = vrot.slane %v373_v62, 1  ;;  %v421_v2 = vmul.f32 %v373_v62, %v373_v62 }
 0x1ac   :  { %v439_v12 = vadd.f32 %v436_v4, %v435_v9  ;;  %v408_v16 = vsel %vm389_vm2, %v402_v32, %v403_v5 }
 0x1ad   :  { %v424_v6 = vadd.f32 %v423_v3, %v421_v2  ;;  %v390_v7 = vsel %vm389_vm2, %v387_v51, %v388_v1  ;;  %v393_v8 = vsel %vm389_vm2, %v388_v1, %v385_v30  ;;  %v410_v22 = vsub.f32 %v408_v16, %v394_v0 }
 0x1ae   :  { %v396_v10 = vsub.f32 %v390_v7, %v372_v48  ;;  %v397_v11 = vsub.f32 %v393_v8, %v373_v62 }
 0x1af   :  { %425 = vadd.xlane.f32.xlu1 %v424_v6  ;;  %v452_v36 = vmul.f32 %v410_v22, %v410_v22 }
 0x1b0   :  { %v401_v13 = vmul.f32 %v397_v11, %v380_v55  ;;  %v437_v14 = vmul.f32 %v396_v10, %v396_v10  ;;  %v404_v15 = vrot.slane %v396_v10, 1 }
 0x1b2   :  { %v438_v18 = vmul.f32 %v401_v13, %v401_v13  ;;  %v440_v19 = vadd.f32 %v439_v12, %v437_v14  ;;  %v405_v20 = vrot.slane %v401_v13, 1  ;;  %v407_v21 = vsel %vm389_vm2, %v403_v5, %v404_v15 }
 0x1b3   :  { %v411_v23 = vsub.f32 %v407_v21, %v399_v61  ;;  %v470_v61 = vand.u32 127, %v374_v34 }
 0x1b4   :  { %v441_v24 = vadd.f32 %v440_v19, %v438_v18  ;;  %v406_v25 = vsel %vm389_vm2, %v404_v15, %v405_v20  ;;  %v409_v26 = vsel %vm389_vm2, %v405_v20, %v402_v32 }
 0x1b5   :  { %v412_v27 = vsub.f32 %v406_v25, %v396_v10  ;;  %v413_v28 = vsub.f32 %v409_v26, %v401_v13  ;;  %v415_v33 = vmul.f32 %v411_v23, %v384_v17  ;;  %vm474_vm4 = vcmp.eq.s32.totalorder %v470_v61, 1 }
 0x1b6   :  { %442 = vadd.xlane.f32.xlu2 %v441_v24  ;;  %vm471_vm5 = vcmp.eq.s32.totalorder %v470_v61, 0  ;;  %vm478_vm6 = vcmp.eq.s32.totalorder %v470_v61, 2 }
 0x1b7   :  { %v417_v35 = vmul.f32 %v413_v28, %v384_v17  ;;  %v453_v37 = vmul.f32 %v415_v33, %v415_v33  ;;  %v454_v38 = vmul.f32 %v412_v27, %v412_v27 }
 0x1b9   :  { %v456_v39 = vadd.f32 %v453_v37, %v452_v36  ;;  %v455_v41 = vmul.f32 %v417_v35, %v417_v35 }
 0x1bb   :  { %v457_v42 = vadd.f32 %v456_v39, %v454_v38 }
 0x1bd   :  { %v458_v43 = vadd.f32 %v457_v42, %v455_v41 }
 0x1bf   :  { %459 = vadd.xlane.f32.xlu0 %v458_v43 }
 0x222   :  { %v426_v44 = vpop.xlane.xlu1 %425 }
 0x223   :  { %v427_v45 = vrot.slane %v426_v44, 4 }
 0x225   :  { %v428_v46 = vadd.f32 %v427_v45, %v426_v44 }
 0x227   :  { %v429_v47 = vrot.slane %v428_v46, 2 }
 0x229   :  { %v443_v48 = vpop.xlane.xlu2 %442  ;;  %v430_v40 = vadd.f32 %v429_v47, %v428_v46 }
 0x22a   :  { %v444_v49 = vrot.slane %v443_v48, 4 }
 0x22b   :  { %v431_v50 = vrot.slane %v430_v40, 1 }
 0x22c   :  { %v445_v51 = vadd.f32 %v444_v49, %v443_v48 }
 0x22d   :  { %v432_v52 = vadd.f32 %v431_v50, %v430_v40 }
 0x22e   :  { %v446_v30 = vrot.slane %v445_v51, 2 }
 0x22f   :  { %595 = vpush %v432_v52 }
 0x230   :  { %v447_v53 = vadd.f32 %v446_v30, %v445_v51 }
 0x232   :  { %v460_v31 = vpop.xlane.xlu0 %459  ;;  %v448_v54 = vrot.slane %v447_v53, 1 }
 0x233   :  { %v461_v55 = vrot.slane %v460_v31, 4 }
 0x234   :  { %v449_v56 = vadd.f32 %v448_v54, %v447_v53 }
 0x235   :  { %v462_v57 = vadd.f32 %v461_v55, %v460_v31 }
 0x236   :  { %597 = vpush %v449_v56 }
 0x237   :  { %v463_v58 = vrot.slane %v462_v57, 2 }
 0x239   :  { %v464_v29 = vadd.f32 %v463_v58, %v462_v57 }
 0x23b   :  { %v465_v59 = vrot.slane %v464_v29, 1 }
 0x23d   :  { %v466_v60 = vadd.f32 %v465_v59, %v464_v29 }
 0x23f   :  { %599 = vpush %v466_v60 }
 0x260   :  { %s596_s9 = spop %595 }
 0x261   :  { %s434_s15 = smul.f32 0.00048828125, %s596_s9 }
 0x263   :  { %v472_v63 = vstv %s434_s15 }
 0x264   :  { %v473_v1 = vsel %vm471_vm5, %v472_v63, 0.0 }
 0x267   :  { %s598_s11 = spop %597 }
 0x268   :  { %s451_s3 = smul.f32 0.00052083336, %s598_s11 }
 0x26a   :  { %v475_v62 = vstv %s451_s3 }
 0x26b   :  { %v476_v0 = vsel %vm474_vm4, %v475_v62, 0.0 }
 0x26c   :  { %v477_v2 = vadd.f32 %v476_v0, %v473_v1 }
 0x270   :  { %s600_s16 = spop %599 }
 0x271   :  { %s468_s17 = smul.f32 0.00055803574, %s600_s16 }
 0x273   :  { %v479_v3 = vstv %s468_s17 }
 0x274   :  { %v480_v4 = vsel %vm478_vm6, %v479_v3, 0.0 }
 0x275   :  { %v481_v5 = vadd.f32 %v480_v4, %v477_v2 }
 0x277   :  { %482 = vst [vmem:[%s850_s12] sm:$0x1] %v481_v5 }

</bundles_post_ra>
